<compile_context>
chip_gen: v6e
topology: v6e:2x2x1
jax: 0.10.0
libtpu: 0.0.40
codegen_flags: <defaults>
</compile_context>

<pallas_src>
import functools
import math

import jax
import jax.numpy as jnp
from jax.experimental import pallas as pl
from jax.experimental.pallas import tpu as pltpu

LN_EPS = 1e-12  # HF ViTConfig.layer_norm_eps
# 56 MiB: fits under v7x's 64 MiB physical VMEM and is well above the 16/32 MiB
# scoped defaults on v5e/v6e (needed at hidden=768 / mlp=3072 scale).
VMEM_LIMIT = 56 * 1024 * 1024


def _round_up(x, m):
    return ((x + m - 1) // m) * m


def _pick_batch_block(B):
    # Larger Bb amortizes weight residency / per-step overhead, but keep at
    # least 2 grid steps so the batch axis can shard across v7x's 2 TCs, and
    # cap at 4 so activations (qkv, h1) fit VMEM at ViT-Base scale.
    for bb in (4, 2):
        if B % bb == 0 and B // bb >= 2:
            return bb
    return 1


# --------------------------------------------------------------------------
# in-kernel helpers
# --------------------------------------------------------------------------
def _layernorm(x, g, b):
    mu = jnp.mean(x, axis=-1, keepdims=True)
    var = jnp.mean((x - mu) ** 2, axis=-1, keepdims=True)
    return (x - mu) * jax.lax.rsqrt(var + LN_EPS) * g + b


# --------------------------------------------------------------------------
# kernels
# --------------------------------------------------------------------------
def _patch_embed_kernel(patches_ref, w_ref, b_ref, out_ref):
    # patches / w are bf16, accumulate f32 on the MXU.
    out_ref[...] = (
        jnp.dot(patches_ref[...], w_ref[...], preferred_element_type=jnp.float32)
        + b_ref[...]
    ).astype(out_ref.dtype)


def _encoder_layer_kernel(
    x_ref,
    ln1g_ref, ln1b_ref,
    wqkv_ref, bqkv_ref,
    wo_ref, bo_ref,
    ln2g_ref, ln2b_ref,
    w1_ref, b1_ref, w2_ref, b2_ref,
    out_ref,
    ctx_ref,                     # VMEM scratch (Bb*S, H) f32
    *, num_heads, seq_real,
):
    Bb, S, H = x_ref.shape
    dh = H // num_heads
    scale = 1.0 / math.sqrt(dh)

    # residual stream stays f32; flatten batch rows for the big matmuls
    x = x_ref[...].astype(jnp.float32).reshape(Bb * S, H)

    # --- self attention (pre-LN, as in HF ViTLayer) ---
    xn = _layernorm(x, ln1g_ref[...], ln1b_ref[...])
    qkv = (
        jnp.dot(xn.astype(jnp.bfloat16), wqkv_ref[...],
                preferred_element_type=jnp.float32)
        + bqkv_ref[...]
    )                                            # (Bb*S, 3H) f32
    q = qkv[:, :H] * scale                       # fold 1/sqrt(dh) into Q once
    k = qkv[:, H:2 * H]
    v = qkv[:, 2 * H:]

    if seq_real < S:
        kmask = (
            jax.lax.broadcasted_iota(jnp.int32, (S, S), 1) < seq_real
        )[None, :, :]                            # mask padded key positions
    else:
        kmask = None

    # static unroll over heads; per-head matmuls are batched over Bb rows.
    # TODO(synk): pairing heads (2*dh = 128 lanes) would make the ctx writes
    # fully lane-aligned at ViT-Base scale.
    for h in range(num_heads):
        sl = slice(h * dh, (h + 1) * dh)
        qh = q[:, sl].reshape(Bb, S, dh).astype(jnp.bfloat16)
        kh = k[:, sl].reshape(Bb, S, dh).astype(jnp.bfloat16)
        vh = v[:, sl].reshape(Bb, S, dh).astype(jnp.bfloat16)
        sc = jnp.einsum("bqd,bkd->bqk", qh, kh,
                        preferred_element_type=jnp.float32)
        if kmask is not None:
            sc = jnp.where(kmask, sc, -1e30)
        sc = sc - jnp.max(sc, axis=-1, keepdims=True)
        p = jnp.exp(sc)
        p = p * pl.reciprocal(jnp.sum(p, axis=-1, keepdims=True), approx=True)
        ctx_h = jnp.einsum("bqk,bkd->bqd", p.astype(jnp.bfloat16), vh,
                           preferred_element_type=jnp.float32)
        # write into preallocated VMEM scratch instead of concatenating parts
        ctx_ref[:, sl] = ctx_h.reshape(Bb * S, dh)

    attn_out = (
        jnp.dot(ctx_ref[...].astype(jnp.bfloat16), wo_ref[...],
                preferred_element_type=jnp.float32)
        + bo_ref[...]
    )
    x = x + attn_out  # residual (f32)

    # --- MLP ---
    xn2 = _layernorm(x, ln2g_ref[...], ln2b_ref[...])
    h1 = (
        jnp.dot(xn2.astype(jnp.bfloat16), w1_ref[...],
                preferred_element_type=jnp.float32)
        + b1_ref[...]
    )
    # TODO(synk): HF ViT uses exact erf-GELU; tanh-approximate GELU used here
    # for Mosaic lowering safety.
    h1 = jax.nn.gelu(h1, approximate=True)
    h2 = (
        jnp.dot(h1.astype(jnp.bfloat16), w2_ref[...],
                preferred_element_type=jnp.float32)
        + b2_ref[...]
    )

    out_ref[...] = (x + h2).reshape(Bb, S, H).astype(out_ref.dtype)


def _head_kernel(cls_ref, lng_ref, lnb_ref, w_ref, b_ref, out_ref):
    x = cls_ref[...].astype(jnp.float32)            # (B, H)
    xn = _layernorm(x, lng_ref[...], lnb_ref[...])  # final ViT layernorm on CLS
    out_ref[...] = (
        jnp.dot(xn.astype(jnp.bfloat16), w_ref[...],
                preferred_element_type=jnp.float32)
        + b_ref[...]
    ).astype(out_ref.dtype)


# --------------------------------------------------------------------------
# pallas_call wrappers
# --------------------------------------------------------------------------
def patch_embed(patches, w, b):
    M, P = patches.shape
    H = w.shape[1]
    TM = 256 if M >= 256 else _round_up(M, 8)
    M_pad = _round_up(M, TM)
    if M_pad != M:
        patches = jnp.pad(patches, ((0, M_pad - M), (0, 0)))

    out = pl.pallas_call(
        _patch_embed_kernel,
        out_shape=jax.ShapeDtypeStruct((M_pad, H), jnp.float32),
        grid=(M_pad // TM,),
        in_specs=[
            pl.BlockSpec((TM, P), lambda i: (i, 0)),
            pl.BlockSpec((P, H), lambda i: (0, 0)),
            pl.BlockSpec((1, H), lambda i: (0, 0)),
        ],
        out_specs=pl.BlockSpec((TM, H), lambda i: (i, 0)),
        compiler_params=pltpu.CompilerParams(
            dimension_semantics=("parallel",),
            vmem_limit_bytes=VMEM_LIMIT,
        ),
    )(patches, w, b)
    return out[:M]


def encoder_layer(x, lp, *, num_heads, seq_real, batch_block):
    B, S, H = x.shape
    M = lp["w1"].shape[1]
    Bb = batch_block

    def const(shape):
        return pl.BlockSpec(shape, lambda b: (0, 0))

    kernel = functools.partial(
        _encoder_layer_kernel, num_heads=num_heads, seq_real=seq_real)

    # TODO(synk): the constant-index weight inputs are still double-buffered by
    # the default pipeline; single-buffering them would halve their VMEM
    # footprint on v7x but pipeline_mode=Buffered(1) is left off for safety.
    return pl.pallas_call(
        kernel,
        out_shape=jax.ShapeDtypeStruct((B, S, H), jnp.float32),
        grid=(B // Bb,),
        in_specs=[
            pl.BlockSpec((Bb, S, H), lambda b: (b, 0, 0)),
            const((1, H)), const((1, H)),
            const((H, 3 * H)), const((1, 3 * H)),
            const((H, H)), const((1, H)),
            const((1, H)), const((1, H)),
            const((H, M)), const((1, M)),
            const((M, H)), const((1, H)),
        ],
        out_specs=pl.BlockSpec((Bb, S, H), lambda b: (b, 0, 0)),
        scratch_shapes=[pltpu.VMEM((Bb * S, H), jnp.float32)],
        compiler_params=pltpu.CompilerParams(
            dimension_semantics=("parallel",),
            vmem_limit_bytes=VMEM_LIMIT,
        ),
    )(
        x,
        lp["ln1_g"], lp["ln1_b"],
        lp["wqkv"], lp["bqkv"],
        lp["wo"], lp["bo"],
        lp["ln2_g"], lp["ln2_b"],
        lp["w1"], lp["b1"], lp["w2"], lp["b2"],
    )


def regression_head(cls_tok, ln_g, ln_b, w, b):
    B, H = cls_tok.shape
    O = w.shape[1]
    return pl.pallas_call(
        _head_kernel,
        out_shape=jax.ShapeDtypeStruct((B, O), jnp.float32),
        grid=(1,),
        in_specs=[
            pl.BlockSpec((B, H), lambda i: (0, 0)),
            pl.BlockSpec((1, H), lambda i: (0, 0)),
            pl.BlockSpec((1, H), lambda i: (0, 0)),
            pl.BlockSpec((H, O), lambda i: (0, 0)),
            pl.BlockSpec((1, O), lambda i: (0, 0)),
        ],
        out_specs=pl.BlockSpec((B, O), lambda i: (0, 0)),
        compiler_params=pltpu.CompilerParams(
            dimension_semantics=("arbitrary",),
            vmem_limit_bytes=VMEM_LIMIT,
        ),
    )(cls_tok, ln_g, ln_b, w, b)


# --------------------------------------------------------------------------
# model glue (plain JAX: unfold, concat, positional add, layer loop)
# --------------------------------------------------------------------------
def vit_regression_forward(x, params, *, patch, num_heads):
    B, C, Hs, Ws = x.shape
    p = patch
    nh, nw = Hs // p, Ws // p
    n_patches = nh * nw
    hidden = params["patch_w"].shape[1]

    # unfold NCHW -> (B*N, C*p*p), channel-major within a patch (Conv2d order);
    # cast to bf16 for the MXU patch-embedding matmul.
    patches = (
        x.reshape(B, C, nh, p, nw, p)
        .transpose(0, 2, 4, 1, 3, 5)
        .reshape(B * n_patches, C * p * p)
        .astype(jnp.bfloat16)
    )

    emb = patch_embed(patches, params["patch_w"], params["patch_b"]).reshape(
        B, n_patches, hidden)

    cls = jnp.broadcast_to(params["cls"], (B, 1, hidden))
    tokens = jnp.concatenate([cls, emb], axis=1) + params["pos"]  # (B, S, hidden)

    # pad sequence to a multiple of 8 sublanes; padded keys are masked in-kernel
    S = n_patches + 1
    S_pad = _round_up(S, 8)
    if S_pad != S:
        tokens = jnp.pad(tokens, ((0, 0), (0, S_pad - S), (0, 0)))

    Bb = _pick_batch_block(B)
    for lp in params["layers"]:
        tokens = encoder_layer(tokens, lp, num_heads=num_heads,
                               seq_real=S, batch_block=Bb)

    cls_tok = tokens[:, 0, :]  # last_hidden_state[:, 0, :] (final LN in head kernel)
    return regression_head(
        cls_tok, params["ln_f_g"], params["ln_f_b"],
        params["head_w"], params["head_b"])


# --------------------------------------------------------------------------
# deterministic parameter init (weights bf16, biases / LN / embeddings f32)
# --------------------------------------------------------------------------
def init_params(key, *, in_chans, patch, img, hidden, mlp, layers, out_dim):
    patch_dim = in_chans * patch * patch
    seq = (img // patch) ** 2 + 1
    keys = jax.random.split(key, 8 + layers)
    bf16 = jnp.bfloat16

    def nrm(k, shape, dtype=jnp.float32):
        return (0.02 * jax.random.normal(k, shape)).astype(dtype)

    params = {
        "patch_w": nrm(keys[0], (patch_dim, hidden), bf16),
        "patch_b": jnp.zeros((1, hidden), jnp.float32),
        "cls": nrm(keys[1], (1, 1, hidden)),
        "pos": nrm(keys[2], (1, seq, hidden)),
        "ln_f_g": jnp.ones((1, hidden), jnp.float32),
        "ln_f_b": jnp.zeros((1, hidden), jnp.float32),
        "head_w": nrm(keys[3], (hidden, out_dim), bf16),
        "head_b": jnp.zeros((1, out_dim), jnp.float32),
        "layers": [],
    }
    for l in range(layers):
        lk = jax.random.split(keys[8 + l], 4)
        params["layers"].append(
            {
                "ln1_g": jnp.ones((1, hidden), jnp.float32),
                "ln1_b": jnp.zeros((1, hidden), jnp.float32),
                "wqkv": nrm(lk[0], (hidden, 3 * hidden), bf16),   # fused Q|K|V
                "bqkv": jnp.zeros((1, 3 * hidden), jnp.float32),
                "wo": nrm(lk[1], (hidden, hidden), bf16),
                "bo": jnp.zeros((1, hidden), jnp.float32),
                "ln2_g": jnp.ones((1, hidden), jnp.float32),
                "ln2_b": jnp.zeros((1, hidden), jnp.float32),
                "w1": nrm(lk[2], (hidden, mlp), bf16),
                "b1": jnp.zeros((1, mlp), jnp.float32),
                "w2": nrm(lk[3], (mlp, hidden), bf16),
                "b2": jnp.zeros((1, hidden), jnp.float32),
            }
        )
    return params


# --------------------------------------------------------------------------
if __name__ == "__main__":
    # Small shapes consistent with the ViT forward (real model: 3x224x224,
    # patch 16, hidden 768, 12 heads, 12 layers; scaled down here).
    B, C, IMG, PATCH = 2, 3, 16, 4
    HIDDEN, MLP, HEADS, LAYERS, OUT_DIM = 32, 64, 4, 2, 5

    key = jax.random.PRNGKey(0)
    kx, kp = jax.random.split(key)
    x = jax.random.normal(kx, (B, C, IMG, IMG), jnp.float32)

    params = init_params(
        kp, in_chans=C, patch=PATCH, img=IMG, hidden=HIDDEN,
        mlp=MLP, layers=LAYERS, out_dim=OUT_DIM,
    )

    out = vit_regression_forward(x, params, patch=PATCH, num_heads=HEADS)
    out = jax.block_until_ready(out)
    assert out.shape == (B, OUT_DIM), out.shape
    assert jnp.all(jnp.isfinite(out))
    print("KERNEL_OK")
</pallas_src>

<mosaic_0001>
module attributes {stable_mosaic.version = 11 : i64} {
  func.func @_patch_embed_kernel(%arg0: i32, %arg1: memref<32x48xbf16, #tpu.memory_space<vmem>>, %arg2: memref<48x32xbf16, #tpu.memory_space<vmem>>, %arg3: memref<1x32xf32, #tpu.memory_space<vmem>>, %arg4: memref<32x32xf32, #tpu.memory_space<vmem>>) attributes {dimension_semantics = [#tpu.dimension_semantics<parallel>], iteration_bounds = array<i64: 1>, scalar_prefetch = 0 : i64, scratch_operands = 0 : i64, tpu.core_type = #tpu.core_type<tc>, window_params = [{transform_indices = @transform_0, window_bounds = array<i64: 32, 48>}, {pipeline_mode = #tpu.pipeline_mode<synchronous>, transform_indices = @transform_1, window_bounds = array<i64: 48, 32>}, {pipeline_mode = #tpu.pipeline_mode<synchronous>, transform_indices = @transform_2, window_bounds = array<i64: 1, 32>}, {transform_indices = @transform_3, window_bounds = array<i64: 32, 32>}]} {
    %c0 = arith.constant 0 : index
    %c0_0 = arith.constant 0 : index
    %0 = vector.load %arg1[%c0, %c0_0] : memref<32x48xbf16, #tpu.memory_space<vmem>>, vector<32x48xbf16>
    %c0_1 = arith.constant 0 : index
    %c0_2 = arith.constant 0 : index
    %1 = vector.load %arg2[%c0_1, %c0_2] : memref<48x32xbf16, #tpu.memory_space<vmem>>, vector<48x32xbf16>
    %cst = arith.constant dense<0.000000e+00> : vector<32x32xf32>
    %2 = tpu.matmul %0, %1, %cst {dimension_numbers = #tpu.dot_dimension_numbers<[1], [0], [0], [1], [0, 0, 1, 1], [], []>} : vector<32x48xbf16>, vector<48x32xbf16>, vector<32x32xf32> -> vector<32x32xf32>
    %c0_3 = arith.constant 0 : index
    %c0_4 = arith.constant 0 : index
    %3 = vector.load %arg3[%c0_3, %c0_4] : memref<1x32xf32, #tpu.memory_space<vmem>>, vector<1x32xf32>
    %4 = vector.broadcast %3 : vector<1x32xf32> to vector<32x32xf32>
    %5 = arith.addf %2, %4 : vector<32x32xf32>
    %c0_5 = arith.constant 0 : index
    %c0_6 = arith.constant 0 : index
    %6 = vector.load %arg4[%c0_5, %c0_6] : memref<32x32xf32, #tpu.memory_space<vmem>>, vector<32x32xf32>
    tpu.vector_store %arg4[%c0_5, %c0_6], %5 {strides = array<i32>} : memref<32x32xf32, #tpu.memory_space<vmem>>, vector<32x32xf32>,
    return
  }
  func.func @transform_0(%arg0: i32) -> (i32, i32) {
    %c0_i32 = arith.constant 0 : i32
    %c0_i32_0 = arith.constant 0 : i32
    return %arg0, %c0_i32 : i32, i32
  }
  func.func @transform_1(%arg0: i32) -> (i32, i32) {
    %c0_i32 = arith.constant 0 : i32
    %c0_i32_0 = arith.constant 0 : i32
    %c0_i32_1 = arith.constant 0 : i32
    return %c0_i32, %c0_i32_0 : i32, i32
  }
  func.func @transform_2(%arg0: i32) -> (i32, i32) {
    %c0_i32 = arith.constant 0 : i32
    %c0_i32_0 = arith.constant 0 : i32
    %c0_i32_1 = arith.constant 0 : i32
    return %c0_i32, %c0_i32_0 : i32, i32
  }
  func.func @transform_3(%arg0: i32) -> (i32, i32) {
    %c0_i32 = arith.constant 0 : i32
    %c0_i32_0 = arith.constant 0 : i32
    return %arg0, %c0_i32 : i32, i32
  }
}

</mosaic_0001>

<bundles_post_ra>
// kernel: tpu_custom_call.1
= control target key start
LH: loop header
LB: loop body
LE: loop exit
PB: predicated region body
PF: predicated region fallthrough
CT: control target
= control target key end

     0   :  { %vm61_vm0 = vcmask 392192   ;;  %s235_s0 = inlined_call_operand.vmem [shape: bf16[32,48], index: 0, kind: input, shape index: {}]   ;;  %s236_s1 = inlined_call_operand.vmem [shape: bf16[48,32], index: 1, kind: input, shape index: {}]   ;;  %s237_s2 = inlined_call_operand.vmem [shape: f32[1,32], index: 2, kind: input, shape index: {}]   ;;  %s238_s3 = inlined_call_operand.hbm [shape: f32[32,32], index: 3, kind: output, shape index: {}]  }
   0x1   :  { %v164_v0 = vld [vmem:[%s236_s1 + $0x10] sm:$0xff]   ;;  %v165_v1 = vld [vmem:[%s236_s1 + $0x8] sm:$0xff]   ;;  %v167_v2 = vld [vmem:[%s235_s0] sm:$0xff]  }
   0x2   :  { %151 = vmatprep.subr.bf16.mxu0 %v164_v0  ;;  %v166_v3 = vld [vmem:[%s236_s1] sm:$0xff]   ;;  %157 = vmatprep.mubr.msk.bf16.mxu0 %vm61_vm0, %v167_v2 }
   0x3   :  { %152 = vmatpush3.bf16.msra.mxu0 %v164_v0 }
   0x4   :  { %153 = vmatprep.subr.bf16.mxu0 %v165_v1 }
   0x5   :  { %8 = vsyncpa [#allocation3], 0  ;;  %v168_v4 = vld [vmem:[%s235_s0 + $0x8] sm:$0xff]   ;;  %v138_v5 = vld [vmem:[%s237_s2] ss:$0 sm:$0xff]  ;;  %vm117_vm1 = vcmask 261120  }
   0x6   :  { %s191_s1 = smov [#allocation2]  }
   0x7   :  { %154 = vmatpush3.bf16.msra.mxu0 %v165_v1  ;;  %s127_s24 = sshll.u32 %s191_s1, 4  ;;  %s128_s24 = int_to_ptr.vmem [resolvable:$true] %s127_s24 }
   0x8   :  { %155 = vmatprep.subr.bf16.mxu0 %v166_v3  ;;  %s169_s0 = scalar_lea.vmem %s128_s24, 512  ;;  %p174_p1 = scmp.lt.s32.totalorder %s128_s24, %s128_s24 }
   0x9   :  { %p170_p0 = scmp.ne.s32.totalorder %s128_s24, %s169_s0  ;;  %p175_p2 = scmp.lt.s32.totalorder %s169_s0, %s169_s0 }
   0xb   :  { %156 = vmatpush3.bf16.msra.mxu0 %v166_v3  ;;  %p176_p3 = por %p175_p2, %p174_p1 }
   0xd   :  { %p177_p4 = pnand %p176_p3, %p170_p0 }
   0xe   :  { %158 = vmatmul.mubr.msk.bf16.vlgmr.msra.gmra.mxu0 %vm61_vm0, %v168_v4 }
  0xce   :  { %v159_v6 = vpop.f32.mrf.mxu0 }
  0xcf   :  { %v111_v7 = vadd.f32 %v159_v6, %v138_v5 }
  0xd0   :  { %v102_v8 = vpop.f32.mrf.mxu0 }
  0xd1   :  { %120 = vst.msk [vmem:[#allocation2 + $0x10] sm:$0xff] %vm117_vm1, %v111_v7  ;;  %v103_v9 = vadd.f32 %v138_v5, %v102_v8 }
  0xd2   :  { %v160_v10 = vpop.f32.mrf.mxu0 }
  0xd3   :  { %118 = vst.msk [vmem:[#allocation2] sm:$0xff] %vm117_vm1, %v103_v9  ;;  %v114_v11 = vadd.f32 %v160_v10, %v138_v5 }
  0xd4   :  { %v105_v12 = vpop.f32.mrf.mxu0 }
  0xd5   :  { %121 = vst.msk [vmem:[#allocation2 + $0x18] sm:$0xff] %vm117_vm1, %v114_v11  ;;  %v106_v13 = vadd.f32 %v138_v5, %v105_v12 }
  0xd7   :  { %119 = vst.msk [vmem:[#allocation2 + $0x8] sm:$0xff] %vm117_vm1, %v106_v13 }
  0xd8   :  { %180 = shalt.err (!%p177_p4)
}
  0xd9   :  { %s192_s2 = smov 128   ;;  %s193_s25 = smov 8  }
  0xda   :  { %133 = dma.vmem_to_hbm [thread:$0]  %s128_s24, 512, %s238_s3, [#allocation3], %s192_s2, %s192_s2, %s193_s25  }
  0xdb   :  { %189 = dma.done.wait [#allocation3], 512  }
  0xdc   :  { %190 = vsyncadd [#allocation3], 4294966784 }
  0xdd   :  { %137 = vsyncpa [#allocation3], 1 }

</bundles_post_ra>
